<compile_context>
chip_gen: v5e
topology: v5e:2x2
jax: 0.10.0
libtpu: 0.0.40
codegen_flags: <defaults>
</compile_context>

<pallas_src>
import jax
import jax.numpy as jnp
from jax.experimental import pallas as pl
from jax.experimental.pallas import tpu as pltpu

LANES = 128
VMEM_LIMIT = 48 * 1024 * 1024           # safe on v7x (64 MiB/TC); generous on v5e/v6e
RHS_RESIDENT_BUDGET = 16 * 1024 * 1024  # keep the RHS fully VMEM-resident when it fits


def _round_up(x, m):
    return ((x + m - 1) // m) * m


def _choose_tile(n, pref=512):
    """Return (tile, padded_extent) for an axis of length n.

    Prefer the full extent (small n, no padding), then a power-of-two divisor of
    n >= 128 (no padding), else pad n up to a multiple of `pref`.
    """
    if n <= pref:
        return n, n
    t = pref
    while t >= 128:
        if n % t == 0:
            return t, n
        t //= 2
    return pref, _round_up(n, pref)


# ---------------------------------------------------------------------------
# Tiled matmul  out[m, p] = a[m, k] @ b[k, p]   (k is the reduction grid axis)
# ---------------------------------------------------------------------------
def _mm_kernel_direct(a_ref, b_ref, o_ref):
    # f32 output: the (tm, p) output block is resident across the k axis, so
    # accumulate straight into it (no scratch, no epilogue copy).
    @pl.when(pl.program_id(1) == 0)
    def _():
        o_ref[...] = jnp.zeros_like(o_ref)

    o_ref[...] += jnp.dot(a_ref[...], b_ref[...],
                          preferred_element_type=jnp.float32)


def _mm_kernel_scratch(a_ref, b_ref, o_ref, acc_ref):
    # Narrow (bf16) output: accumulate in an f32 scratch, cast once at the end.
    @pl.when(pl.program_id(1) == 0)
    def _():
        acc_ref[...] = jnp.zeros_like(acc_ref)

    acc_ref[...] += jnp.dot(a_ref[...], b_ref[...],
                            preferred_element_type=jnp.float32)

    @pl.when(pl.program_id(1) == pl.num_programs(1) - 1)
    def _():
        o_ref[...] = acc_ref[...].astype(o_ref.dtype)


def _tiled_matmul(a, b, *, out_dtype, tm, tk):
    """a @ b with a row/k-tiled grid.

    Operands already carry the MXU input dtype (cast once in the wrapper so the
    DMA moves the narrow dtype; no in-kernel astype of large tiles).  The RHS is
    kept fully VMEM-resident when it fits the budget (no redundant re-reads).
    """
    m, k = a.shape
    k2, p = b.shape
    assert k == k2 and m % tm == 0 and k % tk == 0 and p % LANES == 0

    rhs_bytes = k * p * jnp.dtype(b.dtype).itemsize
    if rhs_bytes <= RHS_RESIDENT_BUDGET:
        b_spec = pl.BlockSpec((k, p), lambda i, kk: (0, 0))    # resident RHS
    else:
        b_spec = pl.BlockSpec((tk, p), lambda i, kk: (kk, 0))  # streamed RHS

    if jnp.dtype(out_dtype) == jnp.dtype(jnp.float32):
        kernel, scratch = _mm_kernel_direct, []
    else:
        kernel, scratch = _mm_kernel_scratch, [pltpu.VMEM((tm, p), jnp.float32)]

    return pl.pallas_call(
        kernel,
        out_shape=jax.ShapeDtypeStruct((m, p), out_dtype),
        grid_spec=pltpu.PrefetchScalarGridSpec(
            num_scalar_prefetch=0,
            grid=(m // tm, k // tk),
            in_specs=[pl.BlockSpec((tm, tk), lambda i, kk: (i, kk)), b_spec],
            out_specs=pl.BlockSpec((tm, p), lambda i, kk: (i, 0)),
            scratch_shapes=scratch),
        compiler_params=pltpu.CompilerParams(
            dimension_semantics=("parallel", "arbitrary"),
            vmem_limit_bytes=VMEM_LIMIT),
    )(a, b)


# ---------------------------------------------------------------------------
# Forward wrapper.
# ---------------------------------------------------------------------------
def vgae_forward(features, adj, w1, w2, wm, *, compute_dtype=jnp.float32,
                 tile_pref=512):
    n, d = features.shape
    dzh = wm.shape[1]
    p = _round_up(dzh, LANES)

    f32 = jnp.float32
    features = features.astype(f32)
    adj = adj.astype(f32)

    # --- tiny weight chain in plain XLA: O(D*dz), irrelevant to runtime ------
    # mean_rows(h @ W1) == mean_rows(h) @ W1 by linearity; Wm is folded into the
    # feature-side weight (re-association) and zero-padded to 128 lanes so every
    # downstream store is lane-dense.
    hmean = jnp.mean(features, axis=0)                    # (D,)
    node = hmean @ w1.astype(f32)                         # (dz//8,)
    w = jnp.tensordot(node, w2.astype(f32), axes=1)       # (D, dz)
    wm_pad = jnp.pad(wm.astype(f32), ((0, 0), (0, p - dzh)))
    wc = w @ wm_pad                                       # (D, p)

    # --- pad N once to the adj tile multiple; zero rows/cols are exact -------
    t, n_pad = _choose_tile(n, tile_pref)
    if n_pad != n:
        adj = jnp.pad(adj, ((0, n_pad - n), (0, n_pad - n)))
        features = jnp.pad(features, ((0, n_pad - n), (0, 0)))

    # --- dtype at the DMA: cast once here, never inside the kernels ----------
    cdt = jnp.dtype(compute_dtype)
    adj_c = adj.astype(cdt)
    feats_c = features.astype(cdt)
    wc_c = wc.astype(cdt)
    inter_dtype = jnp.float32 if cdt == jnp.dtype(jnp.float32) else cdt

    # z   = features @ wc        (N_pad, p)
    z = _tiled_matmul(feats_c, wc_c, out_dtype=inter_dtype, tm=t, tk=d)
    # y   = adj @ z              (N_pad, p)   ( == adj @ features @ w @ Wm )
    y = _tiled_matmul(adj_c, z, out_dtype=inter_dtype, tm=t, tk=t)
    # out = adj @ y              (N_pad, p)   final result stays f32
    out = _tiled_matmul(adj_c, y, out_dtype=jnp.float32, tm=t, tk=t)

    return out[:n, :dzh]


def vgae_ref(features, adj, w1, w2, wm):
    """Pure-JAX reference mirroring the PyTorch forward (gae=True)."""
    node = jnp.mean(features @ w1, axis=0)                # (dz//8,)
    w = jnp.einsum('d,dcf->cf', node, w2)                 # (D, dz)
    hidden = adj @ (features @ w)                         # (N, dz)
    return adj @ (hidden @ wm)                            # (N, dz//2)


def xavier_uniform(key, shape):
    fan_in, fan_out = shape[-2], shape[-1]
    limit = (6.0 / (fan_in + fan_out)) ** 0.5
    return jax.random.uniform(key, shape, jnp.float32, -limit, limit)


if __name__ == "__main__":
    # Small demo shapes consistent with the module: N nodes, input_dim D, dim_z.
    # (At these toy sizes fixed overhead dominates; the tiled adj kernels are
    # what matters at realistic N.)
    N, D, dz = 16, 32, 32
    dz8, dzh = dz // 8, dz // 2

    key = jax.random.PRNGKey(0)
    k_f, k_a, k_w1, k_w2, k_wm = jax.random.split(key, 5)

    features = jax.random.normal(k_f, (N, D), jnp.float32)
    adj = jax.random.uniform(k_a, (N, N), jnp.float32)    # dense "adjacency"

    # Deterministic synthetic params (module __init__ gives the shapes).
    # NOTE: PyTorch's init_params would zero the 3-D W2 (only 2-D params get
    # xavier); we use a nonzero deterministic init so the output is non-trivial.
    w1 = xavier_uniform(k_w1, (D, dz8))
    w2 = xavier_uniform(k_w2, (dz8, D, dz))
    wm = xavier_uniform(k_wm, (dz, dzh))

    ref = vgae_ref(features, adj, w1, w2, wm)

    # f32 path: tight check against the reference.
    out = jax.block_until_ready(
        vgae_forward(features, adj, w1, w2, wm, compute_dtype=jnp.float32))
    assert out.shape == (N, dzh)
    assert jnp.allclose(out, ref, rtol=1e-4, atol=1e-4), "f32 mismatch vs reference"

    # bf16 operands / bf16 intermediates / f32 accumulation (v6e/v7x MXU path):
    # loose sanity check.
    out_bf16 = jax.block_until_ready(
        vgae_forward(features, adj, w1, w2, wm, compute_dtype=jnp.bfloat16))
    rel_err = jnp.max(jnp.abs(out_bf16 - ref)) / (jnp.max(jnp.abs(ref)) + 1e-12)
    assert rel_err < 0.1, f"bf16 path rel err too large: {rel_err}"

    print("KERNEL_OK")
</pallas_src>

<mosaic_0001>
module attributes {stable_mosaic.version = 11 : i64} {
  func.func @_mm_kernel_direct(%arg0: i32, %arg1: i32, %arg2: memref<16x32xf32, #tpu.memory_space<vmem>>, %arg3: memref<32x128xf32, #tpu.memory_space<vmem>>, %arg4: memref<16x128xf32, #tpu.memory_space<vmem>>) attributes {dimension_semantics = [#tpu.dimension_semantics<parallel>, #tpu.dimension_semantics<arbitrary>], iteration_bounds = array<i64: 1, 1>, scalar_prefetch = 0 : i64, scratch_operands = 0 : i64, tpu.core_type = #tpu.core_type<tc>, window_params = [{transform_indices = @transform_0, window_bounds = array<i64: 16, 32>}, {pipeline_mode = #tpu.pipeline_mode<synchronous>, transform_indices = @transform_1, window_bounds = array<i64: 32, 128>}, {transform_indices = @transform_2, window_bounds = array<i64: 16, 128>}]} {
    %c0_i32 = arith.constant 0 : i32
    %0 = arith.cmpi eq, %arg1, %c0_i32 : i32
    %1 = arith.extui %0 : i1 to i32
    %c0_i32_0 = arith.constant 0 : i32
    %2 = arith.cmpi ne, %1, %c0_i32_0 : i32
    scf.if %2 {
      %cst_8 = arith.constant 0.000000e+00 : f32
      %9 = vector.broadcast %cst_8 : f32 to vector<16x128xf32>
      %c0_9 = arith.constant 0 : index
      %c0_10 = arith.constant 0 : index
      %10 = vector.load %arg4[%c0_9, %c0_10] : memref<16x128xf32, #tpu.memory_space<vmem>>, vector<16x128xf32>
      tpu.vector_store %arg4[%c0_9, %c0_10], %9 {strides = array<i32>} : memref<16x128xf32, #tpu.memory_space<vmem>>, vector<16x128xf32>,
    } else {
    }
    %c0 = arith.constant 0 : index
    %c0_1 = arith.constant 0 : index
    %3 = vector.load %arg4[%c0, %c0_1] : memref<16x128xf32, #tpu.memory_space<vmem>>, vector<16x128xf32>
    %c0_2 = arith.constant 0 : index
    %c0_3 = arith.constant 0 : index
    %4 = vector.load %arg2[%c0_2, %c0_3] : memref<16x32xf32, #tpu.memory_space<vmem>>, vector<16x32xf32>
    %c0_4 = arith.constant 0 : index
    %c0_5 = arith.constant 0 : index
    %5 = vector.load %arg3[%c0_4, %c0_5] : memref<32x128xf32, #tpu.memory_space<vmem>>, vector<32x128xf32>
    %cst = arith.constant dense<0.000000e+00> : vector<16x128xf32>
    %6 = tpu.matmul %4, %5, %cst {dimension_numbers = #tpu.dot_dimension_numbers<[1], [0], [0], [1], [0, 0, 1, 1], [], []>} : vector<16x32xf32>, vector<32x128xf32>, vector<16x128xf32> -> vector<16x128xf32>
    %7 = arith.addf %3, %6 : vector<16x128xf32>
    %c0_6 = arith.constant 0 : index
    %c0_7 = arith.constant 0 : index
    %8 = vector.load %arg4[%c0_6, %c0_7] : memref<16x128xf32, #tpu.memory_space<vmem>>, vector<16x128xf32>
    tpu.vector_store %arg4[%c0_6, %c0_7], %7 {strides = array<i32>} : memref<16x128xf32, #tpu.memory_space<vmem>>, vector<16x128xf32>,
    return
  }
  func.func @transform_0(%arg0: i32, %arg1: i32) -> (i32, i32) {
    %c0_i32 = arith.constant 0 : i32
    return %arg0, %arg1 : i32, i32
  }
  func.func @transform_1(%arg0: i32, %arg1: i32) -> (i32, i32) {
    %c0_i32 = arith.constant 0 : i32
    %c0_i32_0 = arith.constant 0 : i32
    %c0_i32_1 = arith.constant 0 : i32
    return %c0_i32, %c0_i32_0 : i32, i32
  }
  func.func @transform_2(%arg0: i32, %arg1: i32) -> (i32, i32) {
    %c0_i32 = arith.constant 0 : i32
    %c0_i32_0 = arith.constant 0 : i32
    return %arg0, %c0_i32 : i32, i32
  }
}

</mosaic_0001>

<bundles_post_ra>
// kernel: tpu_custom_call.1
= control target key start
LH: loop header
LB: loop body
LE: loop exit
PB: predicated region body
PF: predicated region fallthrough
CT: control target
= control target key end

     0   :  { %7 = vsyncpa [#allocation3], 0  ;;  %s240_s0 = inlined_call_operand.hbm [shape: f32[16,32], index: 0, kind: input, shape index: {}]   ;;  %s241_s1 = inlined_call_operand.hbm [shape: f32[32,128], index: 1, kind: input, shape index: {}]   ;;  %s242_s2 = inlined_call_operand.hbm [shape: f32[16,128], index: 2, kind: output, shape index: {}]  }
   0x1   :  { %8 = vsyncpa [#allocation6], 0 }
   0x2   :  { %9 = vsyncpa [#allocation4], 0  ;;  %s14_s11 = sshll.u32 %s240_s0, 4  ;;  %s202_s12 = smov [#allocation2]   ;;  %s15_s11 = int_to_ptr.hbm [resolvable:$true] %s14_s11 }
   0x3   :  { %s16_s13 = sshll.u32 %s202_s12, 4  ;;  %s27_s16 = sshll.u32 %s241_s1, 4  ;;  %s17_s13 = int_to_ptr.vmem [resolvable:$true] %s16_s13  ;;  %s28_s16 = int_to_ptr.hbm [resolvable:$true] %s27_s16 }
   0x4   :  { %s203_s17 = smov 128   ;;  %s204_s18 = smov 8  }
   0x5   :  { %22 = dma.hbm_to_vmem [thread:$0]  %s15_s11, 256, %s17_s13, [#allocation3], %s203_s17, %s203_s17, %s204_s18  }
   0x6   :  { %s205_s19 = smov [#allocation5]  }
   0x7   :  { %s29_s20 = sshll.u32 %s205_s19, 4  ;;  %s30_s20 = int_to_ptr.vmem [resolvable:$true] %s29_s20 }
   0x8   :  { %35 = dma.hbm_to_vmem [thread:$0]  %s28_s16, 512, %s30_s20, [#allocation6], %s203_s17, %s203_s17, %s204_s18  }
   0x9   :  { %196 = dma.done.wait [#allocation3], 256  }
   0xa   :  { %197 = vsyncadd [#allocation3], 4294967040 }
   0xb   :  { %198 = dma.done.wait [#allocation6], 512  }
   0xc   :  { %199 = vsyncadd [#allocation6], 4294966784  ;;  %v57_v0 = vld [vmem:[#allocation5 + $0x18] sm:$0xff]  ;;  %v56_v1 = vld [vmem:[#allocation5 + $0x10] sm:$0xff]  ;;  %vm58_vm0 = vcmask 261120   ;;  %s206_s0 = smov [#allocation7]  }
   0xd   :  { %77 = vmatpush.msra.mxu0 %v57_v0  ;;  %114 = vmatpush.msra.mxu1 %v57_v0  ;;  %v55_v2 = vld [vmem:[#allocation5 + $0x8] sm:$0xff]  ;;  %v54_v3 = vld [vmem:[#allocation5] sm:$0xff]  ;;  %v52_v4 = vld [vmem:[#allocation2] sm:$0xff]  ;;  %s96_s1 = sshll.u32 %s206_s0, 4  ;;  %s98_s23 = sshll.u32 %s242_s2, 4  ;;  %s97_s1 = int_to_ptr.vmem [resolvable:$true] %s96_s1  ;;  %s99_s23 = int_to_ptr.hbm [resolvable:$true] %s98_s23 }
   0xe   :  { %v53_v5 = vld [vmem:[#allocation2 + $0x8] sm:$0xff] }
   0xf   :  { %78 = vmatpush.msra.mxu0 %v56_v1  ;;  %115 = vmatpush.msra.mxu1 %v56_v1 }
  0x11   :  { %79 = vmatpush.msra.mxu0 %v55_v2  ;;  %116 = vmatpush.msra.mxu1 %v55_v2 }
  0x13   :  { %80 = vmatpush.msra.mxu0 %v54_v3  ;;  %117 = vmatpush.msra.mxu1 %v54_v3 }
  0x14   :  { %112 = vmatmul.msk.f32.vlgmr.msra.gmra.mxu0 %vm58_vm0, %v52_v4  ;;  %113 = vmatmul.msk.f32.vlgmr.msra.gmra.mxu1 %vm58_vm0, %v53_v5 }
  0x91   :  { %v82_v6 = vpop.f32.mrf.mxu0  ;;  %v85_v7 = vpop.f32.mrf.mxu1 }
  0x92   :  { %90 = vst [vmem:[#allocation7] sm:$0xff] %v82_v6 }
  0x93   :  { %91 = vst [vmem:[#allocation7 + $0x8] sm:$0xff] %v85_v7 }
  0x94   :  { %104 = dma.vmem_to_hbm [thread:$0]  %s97_s1, 256, %s99_s23, [#allocation4], %s203_s17, %s203_s17, %s204_s18  }
  0x95   :  { %200 = dma.done.wait [#allocation4], 256  }
  0x96   :  { %201 = vsyncadd [#allocation4], 4294967040 }
  0x97   :  { %109 = vsyncpa [#allocation3], 1 }
  0x98   :  { %110 = vsyncpa [#allocation6], 1 }
  0x99   :  { %111 = vsyncpa [#allocation4], 1 }

</bundles_post_ra>
